<compile_context>
chip_gen: v5e
topology: v5e:2x2
jax: 0.10.0
libtpu: 0.0.40
codegen_flags: <defaults>
</compile_context>

<pallas_src>
import functools

import jax
import jax.numpy as jnp
from jax.experimental import pallas as pl
from jax.experimental.pallas import tpu as pltpu

H = 6  # conv "height" (feature count); W = 1, in_channels = 1

# ---- bf16 weight-slab row layout (single DMA, all rows 16-aligned) ----------
FC1W_OFF = 0                       # (H*128, 128): fc1 weight, row = h*128 + c
W2_PN_OFF = FC1W_OFF + H * 128     # (128, 128): rows 0:64 = conv2 kh=0 (prev),
                                   #             rows 64:128 = kh=2 (next)
W2_C_OFF = W2_PN_OFF + 128         # (64, 128):  conv2 kh=1 (center tap)
FC2W_OFF = W2_C_OFF + 64           # (128, 128): fc2 weight, lanes 0:6 valid
WSLAB_ROWS = FC2W_OFF + 128        # 1088

# ---- f32 misc-slab rows (second DMA): conv1 weights + every bias ------------
MISC_W1 = 0        # rows 0..2: conv1 w[kh], lanes 0:64
MISC_B1 = 3        # conv1 bias, lanes 0:64
MISC_B2 = 4        # conv2 bias
MISC_FC1B = 5      # fc1 bias
MISC_FC2B = 6      # fc2 bias, lanes 0:6 valid


# ---------------------------------------------------------------------------
# The single fused kernel.  Activation row layout: r = h * NB + n (h-major,
# batch padded to NB rows per h-block so every slice is 8-sublane aligned).
# ---------------------------------------------------------------------------
def _mynet_fused_kernel(x_ref, misc_ref, wslab_ref, o_ref, a2_ref, *, nb):
    NB = nb
    f32, bf16 = jnp.float32, jnp.bfloat16

    misc = misc_ref[...]                                   # (8, 128) f32, 1 vreg
    # Hoisted broadcasts (JAX does not CSE broadcast_in_dim inside loops).
    w1_0 = jnp.broadcast_to(misc[MISC_W1 + 0:MISC_W1 + 1, 0:64], (NB, 64))
    w1_1 = jnp.broadcast_to(misc[MISC_W1 + 1:MISC_W1 + 2, 0:64], (NB, 64))
    w1_2 = jnp.broadcast_to(misc[MISC_W1 + 2:MISC_W1 + 3, 0:64], (NB, 64))
    b1 = jnp.broadcast_to(misc[MISC_B1:MISC_B1 + 1, 0:64], (NB, 64))
    b2 = misc[MISC_B2:MISC_B2 + 1, :]                      # (1, 128)
    fc1b = misc[MISC_FC1B:MISC_FC1B + 1, :]
    fc2b = misc[MISC_FC2B:MISC_FC2B + 1, :]

    # ---- conv1: Conv2d(1 -> 64, 3x3, pad 1) + ReLU.  W == 1 => only the
    # kw=1 column contributes; IC == 1 => three AXPY taps per output row h.
    # h-shifts are folded into the per-h block build (no x_prev/x_next copies).
    x = x_ref[...]                                         # (NB, H) f32 batch-major
    zcol = jnp.zeros((NB, 1), f32)
    blks = []
    for h in range(H):                                     # static, tiny
        prev_c = x[:, h - 1:h] if h > 0 else zcol          # input row h-1
        cur_c = x[:, h:h + 1]                              # input row h
        next_c = x[:, h + 1:h + 2] if h + 1 < H else zcol  # input row h+1
        blk = prev_c * w1_0 + cur_c * w1_1 + next_c * w1_2 + b1
        blks.append(jnp.maximum(blk, 0.0))
    a1 = jnp.concatenate(blks, axis=0)                     # (H*NB, 64) f32, h-major

    # ---- conv2: Conv2d(64 -> 128, 3x3, pad 1) + ReLU.  prev/next taps merged
    # into ONE K=128 matmul on the lane-concat [a1_prev | a1_next], plus one
    # K=64 center matmul.  bf16 operands, f32 accumulation.
    zblk = jnp.zeros((NB, 64), f32)
    a1_prev = jnp.concatenate([zblk, a1[:(H - 1) * NB, :]], axis=0)
    a1_next = jnp.concatenate([a1[NB:, :], zblk], axis=0)
    p_pn = jnp.concatenate([a1_prev, a1_next], axis=1).astype(bf16)  # (H*NB, 128)
    w2_pn = wslab_ref[W2_PN_OFF:W2_PN_OFF + 128, :]        # (128, 128) bf16
    w2_c = wslab_ref[W2_C_OFF:W2_C_OFF + 64, :]            # (64, 128)  bf16
    acc2 = jnp.dot(p_pn, w2_pn, preferred_element_type=f32)
    acc2 = acc2 + jnp.dot(a1.astype(bf16), w2_c, preferred_element_type=f32)
    a2_ref[...] = jnp.maximum(acc2 + b2, 0.0)              # (H*NB, 128) f32 scratch

    # ---- fc1: Linear(768 -> 128) + ReLU.  The torch NCHW flatten permutation
    # (idx = c*H + h) is folded into the weight slab (row = h*128 + c), so fc1
    # is a sum over h of aligned (NB,128) @ (128,128) matmuls.  fori_loop keeps
    # exactly ONE bf16 weight tile live at a time (bounded vreg pressure).
    def fc1_body(hh, acc):
        r0 = pl.multiple_of(hh * NB, NB)
        a_blk = a2_ref[pl.ds(r0, NB), :].astype(bf16)      # (NB, 128)
        w0 = pl.multiple_of(FC1W_OFF + hh * 128, 128)
        w_tile = wslab_ref[pl.ds(w0, 128), :]              # (128, 128) bf16
        return acc + jnp.dot(a_blk, w_tile, preferred_element_type=f32)

    acc1 = jax.lax.fori_loop(0, H, fc1_body, jnp.zeros((NB, 128), f32))
    h1 = jnp.maximum(acc1 + fc1b, 0.0)                     # (NB, 128) f32

    # ---- fc2: Linear(128 -> 6), zero-padded to 128 lanes => single unmasked
    # lane-dense (NB, 128) f32 store.
    fc2w = wslab_ref[FC2W_OFF:FC2W_OFF + 128, :]           # (128, 128) bf16
    out = jnp.dot(h1.astype(bf16), fc2w, preferred_element_type=f32) + fc2b
    o_ref[...] = out.astype(o_ref.dtype)


# ---------------------------------------------------------------------------
# Deterministic synthetic parameters (same shapes as the PyTorch module).
# ---------------------------------------------------------------------------
def init_params(key):
    ks = jax.random.split(key, 8)

    def w(k, shape, fan_in):
        return jax.random.normal(k, shape, jnp.float32) / jnp.sqrt(fan_in)

    return {
        "conv1_w": w(ks[0], (64, 1, 3, 3), 9.0),     # torch Conv2d: (OC, IC, KH, KW)
        "conv1_b": w(ks[1], (64,), 9.0),
        "conv2_w": w(ks[2], (128, 64, 3, 3), 576.0),
        "conv2_b": w(ks[3], (128,), 576.0),
        "fc1_w":   w(ks[4], (128, 768), 768.0),      # torch Linear: (out, in)
        "fc1_b":   w(ks[5], (128,), 768.0),
        "fc2_w":   w(ks[6], (6, 128), 128.0),
        "fc2_b":   w(ks[7], (6,), 128.0),
    }


def prepare_params(raw):
    """One-time weight re-layout: all MXU weights -> one bf16 (1088,128) slab,
    conv1 weights + all biases -> one f32 (8,128) slab (2 weight DMAs total)."""
    # W == 1 with pad 1 => only the kw=1 column of each conv kernel is used.
    w1 = jnp.transpose(raw["conv1_w"][:, 0, :, 1], (1, 0))          # (3, 64)   (kh, oc)
    w2 = jnp.transpose(raw["conv2_w"][:, :, :, 1], (2, 1, 0))       # (3, 64, 128) (kh, ic, oc)
    w2_pn = jnp.concatenate([w2[0], w2[2]], axis=0)                 # (128, 128): prev|next over K
    # torch flatten index = c*H + h  ->  fc1w[h, c, j] = fc1_w[j, c*H + h]
    fc1w = jnp.transpose(raw["fc1_w"].reshape(128, 128, H), (2, 1, 0))   # (H, 128, 128)
    fc2w = jnp.zeros((128, 128), jnp.float32).at[:, :6].set(raw["fc2_w"].T)

    wslab = jnp.concatenate(
        [fc1w.reshape(H * 128, 128), w2_pn, w2[1], fc2w], axis=0
    ).astype(jnp.bfloat16)                                           # (1088, 128)
    assert wslab.shape == (WSLAB_ROWS, 128)

    misc = jnp.zeros((8, 128), jnp.float32)
    misc = misc.at[MISC_W1:MISC_W1 + 3, 0:64].set(w1)
    misc = misc.at[MISC_B1, 0:64].set(raw["conv1_b"])
    misc = misc.at[MISC_B2, :].set(raw["conv2_b"])
    misc = misc.at[MISC_FC1B, :].set(raw["fc1_b"])
    misc = misc.at[MISC_FC2B, 0:6].set(raw["fc2_b"])
    return {"misc": misc, "wslab": wslab}


# ---------------------------------------------------------------------------
# Forward pass: single fused pallas_call.  (MaxPool2d(1) is identity: dropped.)
# ---------------------------------------------------------------------------
def mynet_forward(params, x_nchw):
    """x_nchw: (N, 1, 6, 1) float32 -> logits (N, 6)."""
    N = x_nchw.shape[0]
    NB = ((N + 7) // 8) * 8                      # pad batch to a sublane multiple
    # Only remaining host glue: free contiguous reshape + tiny batch-tail pad.
    x_pad = jnp.pad(x_nchw.reshape(N, H), ((0, NB - N), (0, 0)))

    flops = 2 * H * NB * 128 * (128 + 64) + 2 * NB * 128 * (H * 128 + 128)
    bytes_accessed = int(4 * (x_pad.size + params["misc"].size + NB * 128)
                         + 2 * params["wslab"].size)

    vmem = pl.BlockSpec(memory_space=pltpu.MemorySpace.VMEM)
    out = pl.pallas_call(
        functools.partial(_mynet_fused_kernel, nb=NB),
        out_shape=jax.ShapeDtypeStruct((NB, 128), jnp.float32),
        in_specs=[vmem, vmem, vmem],
        out_specs=vmem,
        scratch_shapes=[pltpu.VMEM((H * NB, 128), jnp.float32)],  # a2 activations
        cost_estimate=pl.CostEstimate(flops=flops, transcendentals=0,
                                      bytes_accessed=bytes_accessed),
    )(x_pad, params["misc"], params["wslab"])
    return out[:N, :6]


# ---------------------------------------------------------------------------
# Pure-JAX reference (matches the PyTorch module exactly) for validation.
# ---------------------------------------------------------------------------
def mynet_reference(raw, x_nchw):
    dn = ("NCHW", "OIHW", "NCHW")
    y = jax.lax.conv_general_dilated(x_nchw, raw["conv1_w"], (1, 1),
                                     ((1, 1), (1, 1)), dimension_numbers=dn)
    y = jnp.maximum(y + raw["conv1_b"].reshape(1, 64, 1, 1), 0.0)
    y = jax.lax.conv_general_dilated(y, raw["conv2_w"], (1, 1),
                                     ((1, 1), (1, 1)), dimension_numbers=dn)
    y = jnp.maximum(y + raw["conv2_b"].reshape(1, 128, 1, 1), 0.0)
    flat = y.reshape(y.shape[0], -1)                          # torch out.view(N, -1)
    h1 = jnp.maximum(flat @ raw["fc1_w"].T + raw["fc1_b"], 0.0)
    return h1 @ raw["fc2_w"].T + raw["fc2_b"]


if __name__ == "__main__":
    key = jax.random.PRNGKey(0)
    pkey, xkey = jax.random.split(key)
    raw = init_params(pkey)
    params = prepare_params(raw)        # one-time re-layout, outside the jit

    # Batch of 4 weather rows: (N, C=1, H=6 features, W=1); the module's fc
    # layer (128*6*1 inputs) pins the conv input spatial shape to 6x1.
    x = jax.random.normal(xkey, (4, 1, 6, 1), jnp.float32)

    fwd = jax.jit(mynet_forward)
    out = jax.block_until_ready(fwd(params, x))
    assert out.shape == (4, 6) and out.dtype == jnp.float32

    ref = mynet_reference(raw, x)
    # bf16 matmul operands with f32 accumulation => slightly looser tolerance.
    assert jnp.allclose(out, ref, rtol=2e-2, atol=2e-2), (out, ref)
    print("KERNEL_OK")
</pallas_src>

<mosaic_0001>
module attributes {stable_mosaic.version = 11 : i64} {
  func.func @_mynet_fused_kernel(%arg0: memref<8x6xf32, #tpu.memory_space<vmem>>, %arg1: memref<8x128xf32, #tpu.memory_space<vmem>>, %arg2: memref<1088x128xbf16, #tpu.memory_space<vmem>>, %arg3: memref<8x128xf32, #tpu.memory_space<vmem>>, %arg4: memref<48x128xf32, #tpu.memory_space<vmem>>) attributes {dimension_semantics = [], scalar_prefetch = 0 : i64, scratch_operands = 1 : i64, tpu.core_type = #tpu.core_type<tc>} {
    %c0 = arith.constant 0 : index
    %c0_0 = arith.constant 0 : index
    %0 = vector.load %arg1[%c0, %c0_0] : memref<8x128xf32, #tpu.memory_space<vmem>>, vector<8x128xf32>
    %1 = vector.extract_strided_slice %0 {offsets = [0, 0], sizes = [1, 64], strides = [1, 1]} : vector<8x128xf32> to vector<1x64xf32>
    %2 = vector.shape_cast %1 : vector<1x64xf32> to vector<1x64xf32>
    %3 = vector.broadcast %2 : vector<1x64xf32> to vector<8x64xf32>
    %4 = vector.extract_strided_slice %0 {offsets = [1, 0], sizes = [1, 64], strides = [1, 1]} : vector<8x128xf32> to vector<1x64xf32>
    %5 = vector.shape_cast %4 : vector<1x64xf32> to vector<1x64xf32>
    %6 = vector.broadcast %5 : vector<1x64xf32> to vector<8x64xf32>
    %7 = vector.extract_strided_slice %0 {offsets = [2, 0], sizes = [1, 64], strides = [1, 1]} : vector<8x128xf32> to vector<1x64xf32>
    %8 = vector.shape_cast %7 : vector<1x64xf32> to vector<1x64xf32>
    %9 = vector.broadcast %8 : vector<1x64xf32> to vector<8x64xf32>
    %10 = vector.extract_strided_slice %0 {offsets = [3, 0], sizes = [1, 64], strides = [1, 1]} : vector<8x128xf32> to vector<1x64xf32>
    %11 = vector.shape_cast %10 : vector<1x64xf32> to vector<1x64xf32>
    %12 = vector.broadcast %11 : vector<1x64xf32> to vector<8x64xf32>
    %13 = vector.extract_strided_slice %0 {offsets = [4, 0], sizes = [1, 128], strides = [1, 1]} : vector<8x128xf32> to vector<1x128xf32>
    %14 = vector.extract_strided_slice %0 {offsets = [5, 0], sizes = [1, 128], strides = [1, 1]} : vector<8x128xf32> to vector<1x128xf32>
    %15 = vector.extract_strided_slice %0 {offsets = [6, 0], sizes = [1, 128], strides = [1, 1]} : vector<8x128xf32> to vector<1x128xf32>
    %c0_1 = arith.constant 0 : index
    %c0_2 = arith.constant 0 : index
    %16 = vector.load %arg0[%c0_1, %c0_2] : memref<8x6xf32, #tpu.memory_space<vmem>>, vector<8x6xf32>
    %cst = arith.constant 0.000000e+00 : f32
    %17 = vector.broadcast %cst : f32 to vector<8x1xf32>
    %18 = vector.extract_strided_slice %16 {offsets = [0, 0], sizes = [8, 1], strides = [1, 1]} : vector<8x6xf32> to vector<8x1xf32>
    %19 = vector.extract_strided_slice %16 {offsets = [0, 1], sizes = [8, 1], strides = [1, 1]} : vector<8x6xf32> to vector<8x1xf32>
    %20 = vector.broadcast %17 : vector<8x1xf32> to vector<8x64xf32>
    %21 = arith.mulf %20, %3 : vector<8x64xf32>
    %22 = vector.broadcast %18 : vector<8x1xf32> to vector<8x64xf32>
    %23 = arith.mulf %22, %6 : vector<8x64xf32>
    %24 = arith.addf %21, %23 : vector<8x64xf32>
    %25 = vector.broadcast %19 : vector<8x1xf32> to vector<8x64xf32>
    %26 = arith.mulf %25, %9 : vector<8x64xf32>
    %27 = arith.addf %24, %26 : vector<8x64xf32>
    %28 = arith.addf %27, %12 : vector<8x64xf32>
    %cst_3 = arith.constant 0.000000e+00 : f32
    %29 = vector.broadcast %cst_3 : f32 to vector<8x64xf32>
    %30 = arith.maximumf %28, %29 : vector<8x64xf32>
    %31 = vector.extract_strided_slice %16 {offsets = [0, 0], sizes = [8, 1], strides = [1, 1]} : vector<8x6xf32> to vector<8x1xf32>
    %32 = vector.extract_strided_slice %16 {offsets = [0, 1], sizes = [8, 1], strides = [1, 1]} : vector<8x6xf32> to vector<8x1xf32>
    %33 = vector.extract_strided_slice %16 {offsets = [0, 2], sizes = [8, 1], strides = [1, 1]} : vector<8x6xf32> to vector<8x1xf32>
    %34 = vector.broadcast %31 : vector<8x1xf32> to vector<8x64xf32>
    %35 = arith.mulf %34, %3 : vector<8x64xf32>
    %36 = vector.broadcast %32 : vector<8x1xf32> to vector<8x64xf32>
    %37 = arith.mulf %36, %6 : vector<8x64xf32>
    %38 = arith.addf %35, %37 : vector<8x64xf32>
    %39 = vector.broadcast %33 : vector<8x1xf32> to vector<8x64xf32>
    %40 = arith.mulf %39, %9 : vector<8x64xf32>
    %41 = arith.addf %38, %40 : vector<8x64xf32>
    %42 = arith.addf %41, %12 : vector<8x64xf32>
    %cst_4 = arith.constant 0.000000e+00 : f32
    %43 = vector.broadcast %cst_4 : f32 to vector<8x64xf32>
    %44 = arith.maximumf %42, %43 : vector<8x64xf32>
    %45 = vector.extract_strided_slice %16 {offsets = [0, 1], sizes = [8, 1], strides = [1, 1]} : vector<8x6xf32> to vector<8x1xf32>
    %46 = vector.extract_strided_slice %16 {offsets = [0, 2], sizes = [8, 1], strides = [1, 1]} : vector<8x6xf32> to vector<8x1xf32>
    %47 = vector.extract_strided_slice %16 {offsets = [0, 3], sizes = [8, 1], strides = [1, 1]} : vector<8x6xf32> to vector<8x1xf32>
    %48 = vector.broadcast %45 : vector<8x1xf32> to vector<8x64xf32>
    %49 = arith.mulf %48, %3 : vector<8x64xf32>
    %50 = vector.broadcast %46 : vector<8x1xf32> to vector<8x64xf32>
    %51 = arith.mulf %50, %6 : vector<8x64xf32>
    %52 = arith.addf %49, %51 : vector<8x64xf32>
    %53 = vector.broadcast %47 : vector<8x1xf32> to vector<8x64xf32>
    %54 = arith.mulf %53, %9 : vector<8x64xf32>
    %55 = arith.addf %52, %54 : vector<8x64xf32>
    %56 = arith.addf %55, %12 : vector<8x64xf32>
    %cst_5 = arith.constant 0.000000e+00 : f32
    %57 = vector.broadcast %cst_5 : f32 to vector<8x64xf32>
    %58 = arith.maximumf %56, %57 : vector<8x64xf32>
    %59 = vector.extract_strided_slice %16 {offsets = [0, 2], sizes = [8, 1], strides = [1, 1]} : vector<8x6xf32> to vector<8x1xf32>
    %60 = vector.extract_strided_slice %16 {offsets = [0, 3], sizes = [8, 1], strides = [1, 1]} : vector<8x6xf32> to vector<8x1xf32>
    %61 = vector.extract_strided_slice %16 {offsets = [0, 4], sizes = [8, 1], strides = [1, 1]} : vector<8x6xf32> to vector<8x1xf32>
    %62 = vector.broadcast %59 : vector<8x1xf32> to vector<8x64xf32>
    %63 = arith.mulf %62, %3 : vector<8x64xf32>
    %64 = vector.broadcast %60 : vector<8x1xf32> to vector<8x64xf32>
    %65 = arith.mulf %64, %6 : vector<8x64xf32>
    %66 = arith.addf %63, %65 : vector<8x64xf32>
    %67 = vector.broadcast %61 : vector<8x1xf32> to vector<8x64xf32>
    %68 = arith.mulf %67, %9 : vector<8x64xf32>
    %69 = arith.addf %66, %68 : vector<8x64xf32>
    %70 = arith.addf %69, %12 : vector<8x64xf32>
    %cst_6 = arith.constant 0.000000e+00 : f32
    %71 = vector.broadcast %cst_6 : f32 to vector<8x64xf32>
    %72 = arith.maximumf %70, %71 : vector<8x64xf32>
    %73 = vector.extract_strided_slice %16 {offsets = [0, 3], sizes = [8, 1], strides = [1, 1]} : vector<8x6xf32> to vector<8x1xf32>
    %74 = vector.extract_strided_slice %16 {offsets = [0, 4], sizes = [8, 1], strides = [1, 1]} : vector<8x6xf32> to vector<8x1xf32>
    %75 = vector.extract_strided_slice %16 {offsets = [0, 5], sizes = [8, 1], strides = [1, 1]} : vector<8x6xf32> to vector<8x1xf32>
    %76 = vector.broadcast %73 : vector<8x1xf32> to vector<8x64xf32>
    %77 = arith.mulf %76, %3 : vector<8x64xf32>
    %78 = vector.broadcast %74 : vector<8x1xf32> to vector<8x64xf32>
    %79 = arith.mulf %78, %6 : vector<8x64xf32>
    %80 = arith.addf %77, %79 : vector<8x64xf32>
    %81 = vector.broadcast %75 : vector<8x1xf32> to vector<8x64xf32>
    %82 = arith.mulf %81, %9 : vector<8x64xf32>
    %83 = arith.addf %80, %82 : vector<8x64xf32>
    %84 = arith.addf %83, %12 : vector<8x64xf32>
    %cst_7 = arith.constant 0.000000e+00 : f32
    %85 = vector.broadcast %cst_7 : f32 to vector<8x64xf32>
    %86 = arith.maximumf %84, %85 : vector<8x64xf32>
    %87 = vector.extract_strided_slice %16 {offsets = [0, 4], sizes = [8, 1], strides = [1, 1]} : vector<8x6xf32> to vector<8x1xf32>
    %88 = vector.extract_strided_slice %16 {offsets = [0, 5], sizes = [8, 1], strides = [1, 1]} : vector<8x6xf32> to vector<8x1xf32>
    %89 = vector.broadcast %87 : vector<8x1xf32> to vector<8x64xf32>
    %90 = arith.mulf %89, %3 : vector<8x64xf32>
    %91 = vector.broadcast %88 : vector<8x1xf32> to vector<8x64xf32>
    %92 = arith.mulf %91, %6 : vector<8x64xf32>
    %93 = arith.addf %90, %92 : vector<8x64xf32>
    %94 = vector.broadcast %17 : vector<8x1xf32> to vector<8x64xf32>
    %95 = arith.mulf %94, %9 : vector<8x64xf32>
    %96 = arith.addf %93, %95 : vector<8x64xf32>
    %97 = arith.addf %96, %12 : vector<8x64xf32>
    %cst_8 = arith.constant 0.000000e+00 : f32
    %98 = vector.broadcast %cst_8 : f32 to vector<8x64xf32>
    %99 = arith.maximumf %97, %98 : vector<8x64xf32>
    %100 = tpu.concatenate %30, %44, %58, %72, %86, %99 in 0 : vector<8x64xf32>, vector<8x64xf32>, vector<8x64xf32>, vector<8x64xf32>, vector<8x64xf32>, vector<8x64xf32> -> vector<48x64xf32>
    %cst_9 = arith.constant 0.000000e+00 : f32
    %101 = vector.broadcast %cst_9 : f32 to vector<8x64xf32>
    %102 = vector.extract_strided_slice %100 {offsets = [0, 0], sizes = [40, 64], strides = [1, 1]} : vector<48x64xf32> to vector<40x64xf32>
    %103 = tpu.concatenate %101, %102 in 0 : vector<8x64xf32>, vector<40x64xf32> -> vector<48x64xf32>
    %104 = vector.extract_strided_slice %100 {offsets = [8, 0], sizes = [40, 64], strides = [1, 1]} : vector<48x64xf32> to vector<40x64xf32>
    %105 = tpu.concatenate %104, %101 in 0 : vector<40x64xf32>, vector<8x64xf32> -> vector<48x64xf32>
    %106 = tpu.concatenate %103, %105 in 1 : vector<48x64xf32>, vector<48x64xf32> -> vector<48x128xf32>
    %107 = arith.truncf %106 : vector<48x128xf32> to vector<48x128xbf16>
    %c768 = arith.constant 768 : index
    %c0_10 = arith.constant 0 : index
    %108 = vector.load %arg2[%c768, %c0_10] : memref<1088x128xbf16, #tpu.memory_space<vmem>>, vector<128x128xbf16>
    %c896 = arith.constant 896 : index
    %c0_11 = arith.constant 0 : index
    %109 = vector.load %arg2[%c896, %c0_11] : memref<1088x128xbf16, #tpu.memory_space<vmem>>, vector<64x128xbf16>
    %cst_12 = arith.constant dense<0.000000e+00> : vector<48x128xf32>
    %110 = tpu.matmul %107, %108, %cst_12 {dimension_numbers = #tpu.dot_dimension_numbers<[1], [0], [0], [1], [0, 0, 1, 1], [], []>} : vector<48x128xbf16>, vector<128x128xbf16>, vector<48x128xf32> -> vector<48x128xf32>
    %111 = arith.truncf %100 : vector<48x64xf32> to vector<48x64xbf16>
    %cst_13 = arith.constant dense<0.000000e+00> : vector<48x128xf32>
    %112 = tpu.matmul %111, %109, %cst_13 {dimension_numbers = #tpu.dot_dimension_numbers<[1], [0], [0], [1], [0, 0, 1, 1], [], []>} : vector<48x64xbf16>, vector<64x128xbf16>, vector<48x128xf32> -> vector<48x128xf32>
    %113 = arith.addf %110, %112 : vector<48x128xf32>
    %114 = vector.broadcast %13 : vector<1x128xf32> to vector<48x128xf32>
    %115 = arith.addf %113, %114 : vector<48x128xf32>
    %cst_14 = arith.constant 0.000000e+00 : f32
    %116 = vector.broadcast %cst_14 : f32 to vector<48x128xf32>
    %117 = arith.maximumf %115, %116 : vector<48x128xf32>
    %c0_15 = arith.constant 0 : index
    %c0_16 = arith.constant 0 : index
    %118 = vector.load %arg4[%c0_15, %c0_16] : memref<48x128xf32, #tpu.memory_space<vmem>>, vector<48x128xf32>
    tpu.vector_store %arg4[%c0_15, %c0_16], %117 {strides = array<i32>} : memref<48x128xf32, #tpu.memory_space<vmem>>, vector<48x128xf32>,
    %cst_17 = arith.constant 0.000000e+00 : f32
    %119 = vector.broadcast %cst_17 : f32 to vector<8x128xf32>
    %c0_i32 = arith.constant 0 : i32
    %c6_i32 = arith.constant 6 : i32
    %120 = arith.addi %c0_i32, %c6_i32 : i32
    %c1_i32 = arith.constant 1 : i32
    %121 = scf.for %arg5 = %c0_i32 to %120 step %c1_i32 iter_args(%arg6 = %119) -> (vector<8x128xf32>)  : i32 {
      %c8_i32 = arith.constant 8 : i32
      %132 = arith.muli %arg5, %c8_i32 : i32
      %133 = tpu.assume_multiple %132, 8 : i32
      %134 = arith.index_cast %133 : i32 to index
      %c0_24 = arith.constant 0 : index
      %135 = vector.load %arg4[%134, %c0_24] : memref<48x128xf32, #tpu.memory_space<vmem>>, vector<8x128xf32>
      %136 = arith.truncf %135 : vector<8x128xf32> to vector<8x128xbf16>
      %c128_i32 = arith.constant 128 : i32
      %137 = arith.muli %arg5, %c128_i32 : i32
      %c0_i32_25 = arith.constant 0 : i32
      %138 = arith.addi %c0_i32_25, %137 : i32
      %139 = tpu.assume_multiple %138, 128 : i32
      %140 = arith.index_cast %139 : i32 to index
      %c0_26 = arith.constant 0 : index
      %141 = vector.load %arg2[%140, %c0_26] : memref<1088x128xbf16, #tpu.memory_space<vmem>>, vector<128x128xbf16>
      %cst_27 = arith.constant dense<0.000000e+00> : vector<8x128xf32>
      %142 = tpu.matmul %136, %141, %cst_27 {dimension_numbers = #tpu.dot_dimension_numbers<[1], [0], [0], [1], [0, 0, 1, 1], [], []>} : vector<8x128xbf16>, vector<128x128xbf16>, vector<8x128xf32> -> vector<8x128xf32>
      %143 = arith.addf %arg6, %142 : vector<8x128xf32>
      scf.yield %143 : vector<8x128xf32>
    }
    %c6_i32_18 = arith.constant 6 : i32
    %122 = vector.broadcast %14 : vector<1x128xf32> to vector<8x128xf32>
    %123 = arith.addf %121, %122 : vector<8x128xf32>
    %cst_19 = arith.constant 0.000000e+00 : f32
    %124 = vector.broadcast %cst_19 : f32 to vector<8x128xf32>
    %125 = arith.maximumf %123, %124 : vector<8x128xf32>
    %c960 = arith.constant 960 : index
    %c0_20 = arith.constant 0 : index
    %126 = vector.load %arg2[%c960, %c0_20] : memref<1088x128xbf16, #tpu.memory_space<vmem>>, vector<128x128xbf16>
    %127 = arith.truncf %125 : vector<8x128xf32> to vector<8x128xbf16>
    %cst_21 = arith.constant dense<0.000000e+00> : vector<8x128xf32>
    %128 = tpu.matmul %127, %126, %cst_21 {dimension_numbers = #tpu.dot_dimension_numbers<[1], [0], [0], [1], [0, 0, 1, 1], [], []>} : vector<8x128xbf16>, vector<128x128xbf16>, vector<8x128xf32> -> vector<8x128xf32>
    %129 = vector.broadcast %15 : vector<1x128xf32> to vector<8x128xf32>
    %130 = arith.addf %128, %129 : vector<8x128xf32>
    %c0_22 = arith.constant 0 : index
    %c0_23 = arith.constant 0 : index
    %131 = vector.load %arg3[%c0_22, %c0_23] : memref<8x128xf32, #tpu.memory_space<vmem>>, vector<8x128xf32>
    tpu.vector_store %arg3[%c0_22, %c0_23], %130 {strides = array<i32>} : memref<8x128xf32, #tpu.memory_space<vmem>>, vector<8x128xf32>,
    return
  }
}

</mosaic_0001>

<bundles_post_ra>
// kernel: mynet_forward.1
= control target key start
LH: loop header
LB: loop body
LE: loop exit
PB: predicated region body
PF: predicated region fallthrough
CT: control target
= control target key end

     0   :  { %8 = vsyncpa [#allocation4], 0  ;;  %s760_s15 = smov [#allocation3]   ;;  %s761_s17 = smov 64   ;;  %s847_s0 = inlined_call_operand.vmem [shape: f32[8,6], index: 0, kind: input, shape index: {}]   ;;  %s848_s1 = inlined_call_operand.vmem [shape: f32[8,128], index: 1, kind: input, shape index: {}]   ;;  %s849_s2 = inlined_call_operand.hbm [shape: bf16[1088,128], index: 2, kind: input, shape index: {}]   ;;  %s850_s3 = inlined_call_operand.vmem [shape: f32[8,128], index: 3, kind: output, shape index: {}]  }
   0x1   :  { %s17_s14 = sshll.u32 %s849_s2, 4  ;;  %s19_s16 = sshll.u32 %s760_s15, 4  ;;  %s18_s14 = int_to_ptr.hbm [resolvable:$true] %s17_s14  ;;  %s20_s16 = int_to_ptr.vmem [resolvable:$true] %s19_s16 }
   0x2   :  { %s762_s18 = smov 4  }
   0x3   :  { %25 = dma.hbm_to_vmem [thread:$0]  %s18_s14, 8704, %s20_s16, [#allocation4], %s761_s17, %s761_s17, %s762_s18  }
   0x4   :  { %750 = dma.done.wait [#allocation4], 8704  }
   0x5   :  { %751 = vsyncadd [#allocation4], 4294958592  ;;  %v763_v0 = vmov 4   ;;  %v764_v1 = vmov 2   ;;  %v765_v2 = vmov 1   ;;  %v36_v3 = vld [vmem:[%s847_s0] sm:$0xff] }
   0x6   :  { %698 = vset.pattern.permute.xlu1 %v763_v0  ;;  %696 = vset.pattern.permute.xlu0 %v764_v1  ;;  %v766_v4 = vmov 5   ;;  %v767_v5 = vmov 3   ;;  %v768_v6 = vmov 0   ;;  %v640_v7 = vld [vmem:[#allocation3 + $0x1d8] sm:$0xff]  ;;  %v639_v8 = vld [vmem:[#allocation3 + $0x1d0] sm:$0xff]  ;;  %v638_v9 = vld [vmem:[#allocation3 + $0x1c8] sm:$0xff] }
   0x7   :  { %700 = vset.pattern.permute.xlu2 %v765_v2  ;;  %79 = vperm.xlu1 %698, %v36_v3   ;;  %v637_v10 = vld [vmem:[#allocation3 + $0x1c0] sm:$0xff]  ;;  %v801_v12 = vld [vmem:[%s848_s1] sm:$0xff]  ;;  %v636_v35 = vld [vmem:[#allocation3 + $0x1b8] sm:$0xff]  ;;  %vm128_vm0 = vcmask 523264   ;;  %vm769_vm2 = vmmov 1   ;;  %s832_s1 = smov 0  }
   0x8   :  { %57 = vperm.xlu0 %696, %v36_v3   ;;  %46 = vperm.xlu2 %700, %v36_v3   ;;  %v32_v13 = vperm.slane %v801_v12, 0  ;;  %v33_v14 = vperm.slane %v801_v12, 1  ;;  %v34_v16 = vperm.slane %v801_v12, 2  ;;  %v35_v24 = vperm.slane %v801_v12, 3  ;;  %vm558_vm1 = vmneg %vm128_vm0 }
   0x9   :  { %202 = vmatpush.bf16.msra.mxu0 %v640_v7  ;;  %657 = vmatpush.bf16.msra.mxu3 %v640_v7  ;;  %v635_v7 = vld [vmem:[#allocation3 + $0x1b0] sm:$0xff]  ;;  %vm559_vm3 = vmpackc.low %vm769_vm2, %vm558_vm1 }
   0xa   :  { %v37_v17 = vmul.f32 0.0, %v32_v13  ;;  %270 = vmatpush.bf16.msra.mxu1 %v636_v35  ;;  %661 = vmatpush.bf16.msra.mxu2 %v636_v35  ;;  %v100_v40 = vmul.f32 0.0, %v34_v16 }
   0xd   :  { %203 = vmatpush.bf16.msra.mxu0 %v639_v8  ;;  %658 = vmatpush.bf16.msra.mxu3 %v639_v8  ;;  %v634_v8 = vld [vmem:[#allocation3 + $0x1a8] sm:$0xff] }
   0xe   :  { %271 = vmatpush.bf16.msra.mxu1 %v635_v7  ;;  %662 = vmatpush.bf16.msra.mxu2 %v635_v7 }
   0xf   :  { %699 = vset.pattern.permute.xlu1 %v766_v4 }
  0x10   :  { %697 = vset.pattern.permute.xlu0 %v767_v5  ;;  %90 = vperm.xlu1 %699, %v36_v3  }
  0x11   :  { %68 = vperm.xlu0 %697, %v36_v3   ;;  %701 = vset.pattern.permute.xlu2 %v768_v6 }
  0x12   :  { %40 = vperm.xlu2 %701, %v36_v3   ;;  %204 = vmatpush.bf16.msra.mxu0 %v638_v9 }
  0x13   :  { %659 = vmatpush.bf16.msra.mxu3 %v638_v9  ;;  %272 = vmatpush.bf16.msra.mxu1 %v634_v8  ;;  %v633_v9 = vld [vmem:[#allocation3 + $0x1a0] sm:$0xff] }
  0x14   :  { %663 = vmatpush.bf16.msra.mxu2 %v634_v8 }
  0x16   :  { %205 = vmatpush.bf16.msra.mxu0 %v637_v10 }
  0x17   :  { %660 = vmatpush.bf16.msra.mxu3 %v637_v10  ;;  %273 = vmatpush.bf16.msra.mxu1 %v633_v9  ;;  %v632_v10 = vld [vmem:[#allocation3 + $0x198] sm:$0xff] }
  0x18   :  { %664 = vmatpush.bf16.msra.mxu2 %v633_v9 }
  0x19   :  { %717 = vset.pattern.permute.xlu0 %v766_v4 }
  0x1b   :  { %274 = vmatpush.bf16.msra.mxu1 %v632_v10 }
  0x1c   :  { %665 = vmatpush.bf16.msra.mxu2 %v632_v10 }
  0x62   :  { %v47_v11 = vpop.permute.xlu2 %46 }
  0x63   :  { %v49_v19 = vmul.f32 %v47_v11, %v34_v16  ;;  %v54_v21 = vmul.f32 %v47_v11, %v33_v14  ;;  %v64_v33 = vmul.f32 %v47_v11, %v32_v13  ;;  %v631_v11 = vld [vmem:[#allocation3 + $0x190] sm:$0xff] }
  0x64   :  { %275 = vmatpush.bf16.msra.mxu1 %v631_v11  ;;  %666 = vmatpush.bf16.msra.mxu2 %v631_v11 }
  0x6c   :  { %v41_v15 = vpop.permute.xlu2 %40 }
  0x6d   :  { %v43_v18 = vmul.f32 %v41_v15, %v33_v14  ;;  %v53_v22 = vmul.f32 %v41_v15, %v32_v13 }
  0x6f   :  { %v44_v20 = vadd.f32 %v43_v18, %v37_v17  ;;  %v55_v25 = vadd.f32 %v54_v21, %v53_v22 }
  0x71   :  { %v50_v23 = vadd.f32 %v49_v19, %v44_v20 }
  0x73   :  { %v807_v29 = vadd.f32 %v50_v23, %v35_v24 }
  0x75   :  { %v52_v32 = vmax.f32 %v807_v29, 0.0 }
  0x79   :  { %v80_v27 = vpop.permute.xlu1 %79 }
  0x7a   :  { %v58_v26 = vpop.permute.xlu0 %57  ;;  %v97_v38 = vmul.f32 %v80_v27, %v32_v13  ;;  %v87_v47 = vmul.f32 %v80_v27, %v33_v14  ;;  %v82_v50 = vmul.f32 %v80_v27, %v34_v16 }
  0x7b   :  { %v60_v28 = vmul.f32 %v58_v26, %v34_v16  ;;  %v65_v34 = vmul.f32 %v58_v26, %v33_v14  ;;  %v75_v37 = vmul.f32 %v58_v26, %v32_v13 }
  0x7d   :  { %v61_v30 = vadd.f32 %v60_v28, %v55_v25  ;;  %v66_v43 = vadd.f32 %v65_v34, %v64_v33  ;;  %v294_v33 = vperm.slane %v801_v12, 4 }
  0x7f   :  { %v62_v31 = vadd.f32 %v61_v30, %v35_v24 }
  0x81   :  { %v810_v36 = vmax.f32 %v62_v31, 0.0 }
  0x82   :  { %v91_v39 = vpop.permute.xlu1 %90 }
  0x83   :  { %v69_v41 = vpop.permute.xlu0 %68  ;;  %v162_v42 = vpack.c.bf16 %v810_v36, %v52_v32  ;;  %v98_v44 = vmul.f32 %v91_v39, %v33_v14  ;;  %v93_v48 = vmul.f32 %v91_v39, %v34_v16 }
  0x84   :  { %v71_v45 = vmul.f32 %v69_v41, %v34_v16  ;;  %v76_v46 = vmul.f32 %v69_v41, %v33_v14  ;;  %v86_v49 = vmul.f32 %v69_v41, %v32_v13  ;;  %v630_v13 = vld [vmem:[#allocation3 + $0x188] sm:$0xff]  ;;  %v629_v14 = vld [vmem:[#allocation3 + $0x180] sm:$0xff] }
  0x85   :  { %523 = vmatmul.msk.bf16.vlgmr.msra.gmra.mxu0 %vm128_vm0, %v162_v42  ;;  %v99_v51 = vadd.f32 %v98_v44, %v97_v38  ;;  %276 = vmatpush.bf16.msra.mxu1 %v630_v13 }
  0x86   :  { %v72_v52 = vadd.f32 %v71_v45, %v66_v43  ;;  %v77_v53 = vadd.f32 %v76_v46, %v75_v37  ;;  %v88_v54 = vadd.f32 %v87_v47, %v86_v49  ;;  %667 = vmatpush.bf16.msra.mxu2 %v630_v13 }
  0x87   :  { %v101_v55 = vadd.f32 %v100_v40, %v99_v51 }
  0x88   :  { %v83_v56 = vadd.f32 %v82_v50, %v77_v53  ;;  %v73_v57 = vadd.f32 %v72_v52, %v35_v24  ;;  %v94_v58 = vadd.f32 %v93_v48, %v88_v54 }
  0x89   :  { %v102_v60 = vadd.f32 %v101_v55, %v35_v24  ;;  %277 = vmatpush.bf16.msra.mxu1 %v629_v14 }
  0x8a   :  { %v74_v59 = vmax.f32 %v73_v57, 0.0  ;;  %v84_v61 = vadd.f32 %v83_v56, %v35_v24  ;;  %v95_v62 = vadd.f32 %v94_v58, %v35_v24  ;;  %668 = vmatpush.bf16.msra.mxu2 %v629_v14 }
  0x8b   :  { %v103_v0 = vmax.f32 %v102_v60, 0.0 }
  0x8c   :  { %v712_v63 = vpack.i.bf16 %v810_v36, %v74_v59  ;;  %v85_v1 = vmax.f32 %v84_v61, 0.0  ;;  %v96_v2 = vmax.f32 %v95_v62, 0.0 }
  0x8d   :  { %v707_v3 = vpack.i.bf16 0.0, %v103_v0 }
  0x8e   :  { %713 = vrot.lane.b32.xlu0 %v712_v63, %s761_s17  ;;  %v163_v4 = vpack.c.bf16 %v85_v1, %v74_v59  ;;  %v702_v5 = vpack.i.bf16 %v96_v2, %v85_v1  ;;  %v164_v6 = vpack.c.bf16 %v103_v0, %v96_v2  ;;  %v752_v63 = vmov 0.0  }
  0x8f   :  { %708 = vrot.lane.b32.xlu2 %v707_v3, %s761_s17 }
  0x90   :  { %524 = vmatmul.msk.bf16.vlgmr.msra.gmra.mxu3 %vm128_vm0, %v163_v4  ;;  %703 = vrot.lane.b32.xlu1 %v702_v5, %s761_s17 }
  0xa0   :  { %525 = vmatmul.msk.bf16.gmra.mxu3 %vm128_vm0, %v164_v6 }
  0xe9   :  { %v709_v26 = vpop.permute.xlu2 %708 }
  0xea   :  { %v711_v27 = vunpack.i.h.bf16 %v709_v26  ;;  %v710_v28 = vunpack.i.l.bf16 %v709_v26 }
  0xec   :  { %v133_v29 = vsel %vm128_vm0, %v85_v1, %v710_v28  ;;  %v134_v30 = vsel %vm128_vm0, %v96_v2, %v711_v27 }
  0xed   :  { %v137_v31 = vpack.c.bf16 %v134_v30, %v133_v29 }
 0x100   :  { %v714_v15 = vpop.permute.xlu0 %713 }
 0x101   :  { %v716_v16 = vunpack.i.h.bf16 %v714_v15  ;;  %v715_v17 = vunpack.i.l.bf16 %v714_v15 }
 0x102   :  { %v704_v19 = vpop.permute.xlu1 %703 }
 0x103   :  { %v130_v18 = vsel %vm128_vm0, %v52_v32, %v715_v17  ;;  %v706_v21 = vunpack.i.h.bf16 %v704_v19  ;;  %v705_v22 = vunpack.i.l.bf16 %v704_v19  ;;  %v207_v32 = vpop.f32.mrf.mxu0 }
 0x104   :  { %v560_v20 = vpack.c.bf16 %v130_v18, %v716_v16 }
 0x105   :  { %v131_v23 = vsel %vm128_vm0, %v810_v36, %v705_v22  ;;  %v132_v24 = vsel %vm128_vm0, %v74_v59, %v706_v21 }
 0x106   :  { %561 = vmatmul.msk.bf16.vlgmr.msra.gmra.mxu1 %vm559_vm3, %v560_v20  ;;  %v136_v25 = vpack.c.bf16 %v132_v24, %v131_v23 }
 0x108   :  { %283 = vmatmul.bf16.vlgmr.msra.gmra.mxu2 %v136_v25 }
 0x10b   :  { %v209_v39 = vpop.f32.mrf.mxu0 }
 0x113   :  { %v212_v37 = vpop.f32.mrf.mxu3 }
 0x118   :  { %288 = vmatmul.bf16.gmra.mxu2 %v137_v31 }
 0x11b   :  { %v214_v46 = vpop.f32.mrf.mxu3 }
 0x123   :  { %v217_v53 = vpop.f32.mrf.mxu3 }
 0x12b   :  { %v219_v58 = vpop.f32.mrf.mxu3 }
 0x183   :  { %v279_v34 = vpop.f32.mrf.mxu1 }
 0x184   :  { %v280_v35 = vadd.f32 %v279_v34, %v207_v32 }
 0x186   :  { %v295_v36 = vadd.f32 %v294_v33, %v280_v35 }
 0x188   :  { %v301_v38 = vmax.f32 %v295_v36, 0.0 }
 0x18a   :  { %307 = vst [vmem:[#allocation2] sm:$0xff] %v301_v38 }
 0x18b   :  { %v281_v40 = vpop.f32.mrf.mxu1  ;;  %v284_v42 = vpop.f32.mrf.mxu2 }
 0x18c   :  { %v282_v41 = vadd.f32 %v281_v40, %v209_v39  ;;  %v285_v43 = vadd.f32 %v284_v42, %v212_v37 }
 0x18e   :  { %v296_v44 = vadd.f32 %v294_v33, %v282_v41  ;;  %v297_v45 = vadd.f32 %v294_v33, %v285_v43 }
 0x190   :  { %v302_v47 = vmax.f32 %v296_v44, 0.0  ;;  %v303_v48 = vmax.f32 %v297_v45, 0.0 }
 0x192   :  { %308 = vst [vmem:[#allocation2 + $0x8] sm:$0xff] %v302_v47 }
 0x193   :  { %309 = vst [vmem:[#allocation2 + $0x10] sm:$0xff] %v303_v48  ;;  %v286_v49 = vpop.f32.mrf.mxu2 }
 0x194   :  { %v287_v50 = vadd.f32 %v286_v49, %v214_v46 }
 0x196   :  { %v298_v51 = vadd.f32 %v294_v33, %v287_v50 }
 0x198   :  { %v304_v52 = vmax.f32 %v298_v51, 0.0 }
 0x19a   :  { %310 = vst [vmem:[#allocation2 + $0x18] sm:$0xff] %v304_v52 }
 0x19b   :  { %v289_v54 = vpop.f32.mrf.mxu2 }
 0x19c   :  { %v290_v55 = vadd.f32 %v289_v54, %v217_v53 }
 0x19e   :  { %v299_v56 = vadd.f32 %v294_v33, %v290_v55 }
 0x1a0   :  { %v305_v57 = vmax.f32 %v299_v56, 0.0 }
 0x1a2   :  { %311 = vst [vmem:[#allocation2 + $0x20] sm:$0xff] %v305_v57 }
 0x1a3   :  { %v291_v59 = vpop.f32.mrf.mxu2 }
 0x1a4   :  { %v292_v60 = vadd.f32 %v291_v59, %v219_v58 }
 0x1a6   :  { %v300_v61 = vadd.f32 %v294_v33, %v292_v60 }
 0x1a8   :  { %v306_v62 = vmax.f32 %v300_v61, 0.0 }
 0x1aa   :  { %312 = vst [vmem:[#allocation2 + $0x28] sm:$0xff] %v306_v62 }
 0x1ab LB: > { %s563_s21 = sshll.u32 %s758_s1, 7  ;;  %s562_s25 = sshll.u32 %s758_s1, 3  ;;  %s758_s1 = sphi %s832_s1, %s318_s1   ;;  %v754_v63 = vphi %v752_v63, %v753_v63  }
 0x1ac   : > { %s325_s22 = sshra.s32 %s563_s21, 3  ;;  %s321_s26 = scalar_lea.vmem [#allocation2], %s562_s25 }
 0x1ad   : > { %s564_s23 = sshll.u32 %s325_s22, 2  ;;  %s318_s1 = sadd.s32 1, %s758_s1  }
 0x1ae   : > { %s328_s24 = scalar_lea.vmem [#allocation3], %s564_s23  ;;  %p315_p0 = scmp.ge.s32.totalorder %s318_s1, 6  }
 0x1af   : > { %v648_v0 = vld [vmem:[%s328_s24 + $0x38] sm:$0xff]  ;;  %v647_v1 = vld [vmem:[%s328_s24 + $0x30] sm:$0xff]  ;;  %v646_v2 = vld [vmem:[%s328_s24 + $0x28] sm:$0xff]  ;;  %v407_v19 = vperm.slane (%p315_p0), %v801_v12, 5  ;;  %v427_v26 = vperm.slane (%p315_p0), %v801_v12, 6 }
 0x1b0   : > { %393 = vmatpush.bf16.msra.mxu0 %v648_v0  ;;  %v645_v3 = vld [vmem:[%s328_s24 + $0x20] sm:$0xff]  ;;  %v644_v4 = vld [vmem:[%s328_s24 + $0x18] sm:$0xff]  ;;  %v643_v5 = vld [vmem:[%s328_s24 + $0x10] sm:$0xff] }
 0x1b1   : > { %v642_v6 = vld [vmem:[%s328_s24 + $0x8] sm:$0xff]  ;;  %v641_v7 = vld [vmem:[%s328_s24] sm:$0xff]  ;;  %v654_v16 = vld [vmem:[#allocation3 + $0x208] sm:$0xff] (%p315_p0) }
 0x1b2   : > { %v322_v8 = vld [vmem:[%s321_s26] sm:$0xff]  ;;  %v656_v14 = vld [vmem:[#allocation3 + $0x218] sm:$0xff] (%p315_p0)  ;;  %v653_v17 = vld [vmem:[#allocation3 + $0x200] sm:$0xff] (%p315_p0) }
 0x1b3   : > { %v323_v9 = vpack.c.bf16 %v322_v8, %v322_v8  ;;  %v655_v15 = vld [vmem:[#allocation3 + $0x210] sm:$0xff] (%p315_p0)  ;;  %v652_v18 = vld [vmem:[#allocation3 + $0x1f8] sm:$0xff] (%p315_p0)  ;;  %v650_v22 = vld [vmem:[#allocation3 + $0x1e8] sm:$0xff] (%p315_p0) }
 0x1b4   : > { %394 = vmatpush.bf16.msra.mxu0 %v647_v1  ;;  %v651_v20 = vld [vmem:[#allocation3 + $0x1f0] sm:$0xff] (%p315_p0)  ;;  %v649_v24 = vld [vmem:[#allocation3 + $0x1e0] sm:$0xff] (%p315_p0) }
 0x1b8   : > { %395 = vmatpush.bf16.msra.mxu0 %v646_v2 }
 0x1bc   : > { %396 = vmatpush.bf16.msra.mxu0 %v645_v3 }
 0x1c0   : > { %397 = vmatpush.bf16.msra.mxu0 %v644_v4 }
 0x1c4   : > { %398 = vmatpush.bf16.msra.mxu0 %v643_v5 }
 0x1c8   : > { %399 = vmatpush.bf16.msra.mxu0 %v642_v6 }
 0x1cc   : > { %400 = vmatpush.bf16.msra.mxu0 %v641_v7 }
 0x1cf   : > { %401 = vmatmul.bf16.vlgmr.msra.gmra.mxu0 %v323_v9 }
 0x1d0   :  { %476 = vmatpush.bf16.msra.mxu0 (%p315_p0), %v656_v14 }
 0x1d4   :  { %477 = vmatpush.bf16.msra.mxu0 (%p315_p0), %v655_v15 }
 0x1d8   :  { %478 = vmatpush.bf16.msra.mxu0 (%p315_p0), %v654_v16 }
 0x1dc   :  { %479 = vmatpush.bf16.msra.mxu0 (%p315_p0), %v653_v17 }
 0x1e0   :  { %480 = vmatpush.bf16.msra.mxu0 (%p315_p0), %v652_v18 }
 0x1e4   :  { %481 = vmatpush.bf16.msra.mxu0 (%p315_p0), %v651_v20 }
 0x1e8   :  { %482 = vmatpush.bf16.msra.mxu0 (%p315_p0), %v650_v22 }
 0x1ec   :  { %483 = vmatpush.bf16.msra.mxu0 (%p315_p0), %v649_v24 }
 0x24c   : > { %v402_v10 = vpop.f32.mrf.mxu0 }
 0x24d   : > { %v406_v11 = vadd.f32 %v754_v63, %v402_v10  }
 0x24f   : > { %v753_v63 = vmov %v406_v11   ;;  %v408_v21 = vadd.f32 (%p315_p0), %v407_v19, %v406_v11 }
 0x250   :  { %317 = sbr.rel (!%p315_p0) target bundleno = 427 (0x1ab), region = 45 }
 0x251   :  { %v409_v23 = vmax.f32 (%p315_p0), %v408_v21, 0.0 }
 0x253   :  { %v426_v25 = vpack.c.bf16 (%p315_p0), %v409_v23, %v409_v23 }
 0x254   : > { %v404_v13 = vpop.f32.mrf.mxu0 }
 0x255   :  { %484 = vmatmul.bf16.vlgmr.msra.gmra.mxu0 %v426_v25 }
 0x2d2   :  { %v485_v27 = vpop.f32.mrf.mxu0 }
 0x2d3   :  { %v486_v28 = vadd.f32 %v485_v27, %v427_v26 }
 0x2d5   :  { %489 = vst [vmem:[%s850_s3] sm:$0xff] %v486_v28 }
 0x2da   :  { %v487_v29 = vpop.f32.mrf.mxu0 }
 0x2db   :  { %494 = vsyncpa [#allocation4], 1 }

</bundles_post_ra>
